<compile_context>
chip_gen: v7x
topology: tpu7x:2x2x1
jax: 0.10.0
libtpu: 0.0.40
codegen_flags: <defaults>
</compile_context>

<pallas_src>
import jax
import jax.numpy as jnp
from jax import lax
from jax.experimental import pallas as pl
from jax.experimental.pallas import tpu as pltpu


def _decoder_kernel(code_ref, wt_ref, out_ref):
    # code_ref: (B, K)    -- full batch of codes (resident across grid steps)
    # wt_ref:   (K, TN)   -- pre-transposed weight tile, lane-dense along TN
    # out_ref:  (B, TN)
    code = code_ref[...]
    w = wt_ref[...]
    if w.dtype != code.dtype:
        # bf16 weight streaming: cast the (tiny) code block to match so the
        # MXU runs natively in bf16; accumulation stays f32.
        code = code.astype(w.dtype)
    out_ref[...] = lax.dot_general(
        code,
        w,
        dimension_numbers=(((1,), (0,)), ((), ())),
        preferred_element_type=jnp.float32,
    ).astype(out_ref.dtype)


def _round_up(x, m):
    return ((x + m - 1) // m) * m


def _vmem_budget_and_limit():
    """Per-generation scoped VMEM limit and the tile-selection budget."""
    try:
        cap = int(pltpu.get_tpu_info().vmem_capacity_bytes)
    except Exception:
        cap = 32 << 20  # conservative fallback
    # Request at most half the physical capacity (capped at 64 MiB), and keep
    # 4 MiB headroom for Mosaic internal scratch when sizing tiles.
    limit = min(cap // 2, 64 << 20)
    limit = max(limit, 16 << 20)
    budget = max(limit - (4 << 20), 8 << 20)
    return budget, limit


def _choose_tile(output_dim, K, B, w_itemsize, budget):
    """Pick the output-dim tile using (8,128)-padded VMEM footprints."""

    def padded_need(tn):
        tn_pad = _round_up(tn, 128)
        # Conservative: count 4 B/elem for every buffer (over-counts bf16).
        w_tile = _round_up(K, 8) * tn_pad * 4            # (K, tn) weight block
        c_tile = _round_up(B, 8) * _round_up(K, 128) * 4  # (B, K) code block
        o_tile = _round_up(B, 8) * tn_pad * 4            # (B, tn) out block
        return 2 * (w_tile + c_tile + o_tile)            # double-buffered

    weight_stream_bytes = output_dim * K * w_itemsize
    # Large weight streams: force >= 2 grid steps so both v7x TensorCores can
    # share the HBM-bound stream (harmless on single-TC v5e/v6e).
    min_steps = 2 if weight_stream_bytes > (4 << 20) else 1

    # Single-step fast path (also covers output_dim not divisible by 128).
    if min_steps == 1 and padded_need(output_dim) <= budget:
        return output_dim
    if output_dim % 128 != 0:
        if padded_need(output_dim) <= budget:
            return output_dim
        raise ValueError(
            "output_dim not a multiple of 128 and too large for a single "
            "VMEM-resident step")

    # Tiled path: tn must divide output_dim and be a multiple of 128.
    candidates = [d for d in range(128, output_dim + 1, 128)
                  if output_dim % d == 0]
    candidates.sort(reverse=True)
    for tn in candidates:
        if output_dim // tn >= min_steps and padded_need(tn) <= budget:
            return tn
    return candidates[-1]  # smallest (128) as last resort


def decoder_forward(code, weight_t, *, n_channels, im_size, tn=None):
    """Pallas implementation of Decoder.forward.

    Args:
      code:     (B, code_dim) float32
      weight_t: (code_dim, output_dim) -- nn.Linear.weight pre-transposed once
                at init time (f32 or bf16 for weight streaming)
      n_channels, im_size: reshape params (output_dim == n_channels*im_size**2)
      tn: optional output-dim tile override (must divide output_dim)

    Returns:
      (B, n_channels, im_size, im_size) float32
    """
    B, K = code.shape
    Kw, output_dim = weight_t.shape
    assert Kw == K
    assert output_dim == n_channels * im_size * im_size

    budget, vmem_limit = _vmem_budget_and_limit()
    if tn is None:
        tn = _choose_tile(output_dim, K, B, weight_t.dtype.itemsize, budget)
    assert output_dim % tn == 0, "tn must divide output_dim"

    grid = (output_dim // tn,)

    out2d = pl.pallas_call(
        _decoder_kernel,
        out_shape=jax.ShapeDtypeStruct((B, output_dim), code.dtype),
        grid_spec=pltpu.PrefetchScalarGridSpec(
            num_scalar_prefetch=0,
            grid=grid,
            in_specs=[
                # full (B, K) code block every step (tiny, stays resident)
                pl.BlockSpec((B, K), lambda j: (0, 0)),
                # lane-dense (K, tn) tiles of the pre-transposed weight
                pl.BlockSpec((K, tn), lambda j: (0, j)),
            ],
            out_specs=pl.BlockSpec((B, tn), lambda j: (0, j)),
        ),
        compiler_params=pltpu.CompilerParams(
            dimension_semantics=("parallel",),
            vmem_limit_bytes=int(vmem_limit),
        ),
    )(code, weight_t)

    # view(B, n_channels, im_size, -1): a free bitcast, no slice needed.
    return out2d.reshape(B, n_channels, im_size, im_size)


def init_decoder_weight_t(key, code_dim, output_dim, dtype=jnp.float32):
    """nn.Linear default init U(-1/sqrt(in)), stored pre-transposed (K, N)."""
    bound = 1.0 / jnp.sqrt(jnp.float32(code_dim))
    w = jax.random.uniform(
        key, (code_dim, output_dim), dtype=jnp.float32,
        minval=-bound, maxval=bound)
    return w.astype(dtype)


if __name__ == "__main__":
    # Small config consistent with the module:
    #   patch_size=16, im_size=16, n_channels=4, code_dim=32, batch=2
    batch = 2
    n_channels = 4
    im_size = 16
    code_dim = 32
    output_dim = n_channels * im_size * im_size  # 1024

    key = jax.random.PRNGKey(0)
    k_w, k_c = jax.random.split(key)
    weight_t = init_decoder_weight_t(k_w, code_dim, output_dim)   # (K, N) f32
    code = jax.random.normal(k_c, (batch, code_dim), dtype=jnp.float32)

    # --- f32 weight path (exact match to the PyTorch Linear math) ---
    out = decoder_forward(code, weight_t, n_channels=n_channels, im_size=im_size)
    out = jax.block_until_ready(out)
    ref = (code @ weight_t).reshape(batch, n_channels, im_size, im_size)
    assert out.shape == (batch, n_channels, im_size, im_size)
    assert jnp.allclose(out, ref, atol=1e-5, rtol=1e-5)

    # --- bf16 weight-streaming path (halves HBM traffic; f32 accumulation) ---
    weight_t_bf16 = weight_t.astype(jnp.bfloat16)
    out_bf = decoder_forward(code, weight_t_bf16,
                             n_channels=n_channels, im_size=im_size)
    out_bf = jax.block_until_ready(out_bf)
    ref_bf = lax.dot_general(
        code.astype(jnp.bfloat16), weight_t_bf16,
        dimension_numbers=(((1,), (0,)), ((), ())),
        preferred_element_type=jnp.float32,
    ).reshape(batch, n_channels, im_size, im_size)
    assert jnp.allclose(out_bf, ref_bf, atol=2e-2, rtol=2e-2)

    # TODO(synk): for per-patch decoding at scale, fold all codes into the
    # batch dimension of a single decoder_forward call (B >= 128) instead of
    # looping calls, so the weight stream and launch overhead are amortized.

    print("KERNEL_OK")
</pallas_src>

<mosaic_0001>
module attributes {stable_mosaic.version = 11 : i64} {
  func.func @_decoder_kernel(%arg0: i32, %arg1: memref<2x32xf32, #tpu.memory_space<vmem>>, %arg2: memref<32x1024xf32, #tpu.memory_space<vmem>>, %arg3: memref<2x1024xf32, #tpu.memory_space<vmem>>) attributes {dimension_semantics = [#tpu.dimension_semantics<parallel>], iteration_bounds = array<i64: 1>, scalar_prefetch = 0 : i64, scratch_operands = 0 : i64, tpu.core_type = #tpu.core_type<tc>, window_params = [{pipeline_mode = #tpu.pipeline_mode<synchronous>, transform_indices = @transform_0, window_bounds = array<i64: 2, 32>}, {transform_indices = @transform_1, window_bounds = array<i64: 32, 1024>}, {transform_indices = @transform_2, window_bounds = array<i64: 2, 1024>}]} {
    %c0 = arith.constant 0 : index
    %c0_0 = arith.constant 0 : index
    %0 = vector.load %arg1[%c0, %c0_0] : memref<2x32xf32, #tpu.memory_space<vmem>>, vector<2x32xf32>
    %c0_1 = arith.constant 0 : index
    %c0_2 = arith.constant 0 : index
    %1 = vector.load %arg2[%c0_1, %c0_2] : memref<32x1024xf32, #tpu.memory_space<vmem>>, vector<32x1024xf32>
    %cst = arith.constant dense<0.000000e+00> : vector<2x1024xf32>
    %2 = tpu.matmul %0, %1, %cst {dimension_numbers = #tpu.dot_dimension_numbers<[1], [0], [0], [1], [0, 0, 1, 1], [], []>} : vector<2x32xf32>, vector<32x1024xf32>, vector<2x1024xf32> -> vector<2x1024xf32>
    %c0_3 = arith.constant 0 : index
    %c0_4 = arith.constant 0 : index
    %3 = vector.load %arg3[%c0_3, %c0_4] : memref<2x1024xf32, #tpu.memory_space<vmem>>, vector<2x1024xf32>
    tpu.vector_store %arg3[%c0_3, %c0_4], %2 {strides = array<i32>} : memref<2x1024xf32, #tpu.memory_space<vmem>>, vector<2x1024xf32>,
    return
  }
  func.func @transform_0(%arg0: i32) -> (i32, i32) {
    %c0_i32 = arith.constant 0 : i32
    %c0_i32_0 = arith.constant 0 : i32
    %c0_i32_1 = arith.constant 0 : i32
    return %c0_i32, %c0_i32_0 : i32, i32
  }
  func.func @transform_1(%arg0: i32) -> (i32, i32) {
    %c0_i32 = arith.constant 0 : i32
    %c0_i32_0 = arith.constant 0 : i32
    return %c0_i32, %arg0 : i32, i32
  }
  func.func @transform_2(%arg0: i32) -> (i32, i32) {
    %c0_i32 = arith.constant 0 : i32
    %c0_i32_0 = arith.constant 0 : i32
    return %c0_i32, %arg0 : i32, i32
  }
}

</mosaic_0001>

<bundles_post_ra>
// kernel: tpu_custom_call.1
= control target key start
LH: loop header
LB: loop body
LE: loop exit
PB: predicated region body
PF: predicated region fallthrough
CT: control target
= control target key end

     0   :  { %7 = vsyncpa [#allocation3], 0  ;;  %s609_s0 = inlined_call_operand.hbm [shape: f32[2,32], index: 0, kind: input, shape index: {}]   ;;  %s610_s1 = inlined_call_operand.hbm [shape: f32[32,1024], index: 1, kind: input, shape index: {}]   ;;  %s611_s2 = inlined_call_operand.hbm [shape: f32[2,1024], index: 2, kind: output, shape index: {}]  }
   0x1   :  { %8 = vsyncpa [#allocation6], 0 }
   0x2   :  { %9 = vsyncpa [#allocation4], 0  ;;  %s536_s9 = smov [#allocation2]   ;;  %s537_s11 = smov [#allocation5]  }
   0x3   :  { %s16_s10 = sshll.u32 %s536_s9, 4  ;;  %s25_s12 = sshll.u32 %s537_s11, 4  ;;  %s17_s10 = int_to_ptr.vmem [resolvable:$true] %s16_s10  ;;  %s558_s12 = int_to_ptr.vmem [resolvable:$true] %s25_s12 }
   0x4   :  { %s464_s15 = scalar_lea.hbm %s609_s0, 32 }
   0x5   :  { %p465_p0 = scmp.ne.s32.totalorder %s609_s0, %s464_s15  ;;  %p468_p1 = scmp.lt.u32.totalorder %s464_s15, %s609_s0 }
   0x7   :  { %p470_p2 = pnand %p468_p1, %p465_p0 }
   0x9   :  { %473 = shalt.err (!%p470_p2)
}
   0xa   :  { %s474_s20 = scalar_lea.vmem %s17_s10, 32  ;;  %p479_p4 = scmp.lt.s32.totalorder %s17_s10, %s17_s10 }
   0xb   :  { %p475_p3 = scmp.ne.s32.totalorder %s17_s10, %s474_s20  ;;  %p480_p5 = scmp.lt.s32.totalorder %s474_s20, %s474_s20 }
   0xd   :  { %p481_p6 = por %p480_p5, %p479_p4 }
   0xf   :  { %p482_p7 = pnand %p481_p6, %p475_p3 }
  0x11   :  { %485 = shalt.err (!%p482_p7)
}
  0x12   :  { %19 = dma.hbm_to_vmem [thread:$0]  %s609_s0, 32, %s17_s10, [#allocation3]  }
  0x13   :  { %s486_s25 = scalar_lea.hbm %s610_s1, 4096 }
  0x14   :  { %p487_p8 = scmp.ne.s32.totalorder %s610_s1, %s486_s25  ;;  %p490_p9 = scmp.lt.u32.totalorder %s486_s25, %s610_s1 }
  0x16   :  { %p492_p10 = pnand %p490_p9, %p487_p8 }
  0x18   :  { %495 = shalt.err (!%p492_p10)
}
  0x19   :  { %s496_s30 = scalar_lea.vmem %s558_s12, 4096  ;;  %p501_p12 = scmp.lt.s32.totalorder %s558_s12, %s558_s12 }
  0x1a   :  { %p497_p11 = scmp.ne.s32.totalorder %s558_s12, %s496_s30  ;;  %p502_p13 = scmp.lt.s32.totalorder %s496_s30, %s496_s30 }
  0x1c   :  { %p503_p0 = por %p502_p13, %p501_p12 }
  0x1e   :  { %p504_p1 = pnand %p503_p0, %p497_p11 }
  0x20   :  { %507 = shalt.err (!%p504_p1)
}
  0x21   :  { %s538_s0 = smov 1024   ;;  %s539_s3 = smov 64  }
  0x22   :  { %31 = dma.hbm_to_vmem [thread:$0]  %s610_s1, 4096, %s558_s12, [#allocation6], %s538_s0, %s538_s0, %s539_s3  }
  0x23   :  { %530 = dma.done.wait [#allocation3], 32  }
  0x24   :  { %531 = vsyncadd [#allocation3], 4294967264 }
  0x25   :  { %532 = dma.done.wait [#allocation6], 4096  }
  0x26   :  { %533 = vsyncadd [#allocation6], 4294963200  ;;  %v540_v0 = vmov 0.0   ;;  %v40_v1 = vld [vmem:[#allocation5 + $0x8] sm:$0xff]  ;;  %v42_v3 = vld [vmem:[#allocation5 + $0x18] sm:$0xff]  ;;  %vm71_vm0 = vcmask 261120   ;;  %v372_v52 = vlaneseq }
  0x27   :  { %139 = vmatprep.mubr.f32.mxu0 %v540_v0  ;;  %210 = vmatprep.mubr.f32.mxu1 %v540_v0  ;;  %v48_v2 = vld [vmem:[#allocation5 + $0x48] sm:$0xff]  ;;  %v50_v5 = vld [vmem:[#allocation5 + $0x58] sm:$0xff]  ;;  %v39_v6 = vld [vmem:[#allocation5] sm:$0xff]  ;;  %v541_v50 = vmov 1983009808   ;;  %s542_s1 = smov [#allocation7]  }
  0x28   :  { %v425_v4 = vpack.c.bf16 %v48_v2, %v40_v1  ;;  %v47_v7 = vld [vmem:[#allocation5 + $0x40] sm:$0xff]  ;;  %v433_v8 = vpack.c.bf16 %v50_v5, %v42_v3  ;;  %v41_v10 = vld [vmem:[#allocation5 + $0x10] sm:$0xff]  ;;  %v56_v12 = vld [vmem:[#allocation5 + $0x88] sm:$0xff]  ;;  %v370_v51 = vunpack.c.l.s4 %v541_v50  ;;  %v373_v54 = vshrl.u32 %v372_v52, 7  ;;  %s411_s6 = sshll.u32 %s542_s1, 4  ;;  %s412_s6 = int_to_ptr.vmem [resolvable:$true] %s411_s6 }
  0x29   :  { %v427_v9 = vpack.c.bf16 %v47_v7, %v39_v6  ;;  %v49_v11 = vld [vmem:[#allocation5 + $0x50] sm:$0xff]  ;;  %v64_v14 = vld [vmem:[#allocation5 + $0xc8] sm:$0xff]  ;;  %v58_v15 = vld [vmem:[#allocation5 + $0x98] sm:$0xff]  ;;  %s508_s7 = scalar_lea.vmem %s412_s6, 256  ;;  %p513_p3 = scmp.lt.s32.totalorder %s412_s6, %s412_s6 }
  0x2a   :  { %426 = vmatprep.subr.bf16.mxu0 %v425_v4  ;;  %v435_v13 = vpack.c.bf16 %v49_v11, %v41_v10  ;;  %v66_v16 = vld [vmem:[#allocation5 + $0xd8] sm:$0xff]  ;;  %434 = vmatprep.subr.bf16.mxu1 %v433_v8  ;;  %v429_v17 = vpack.c.bf16 %v64_v14, %v56_v12  ;;  %v55_v19 = vld [vmem:[#allocation5 + $0x80] sm:$0xff]  ;;  %v57_v21 = vld [vmem:[#allocation5 + $0x90] sm:$0xff]  ;;  %v371_v53 = vunpack.c.0.s8 %v370_v51  ;;  %p509_p2 = scmp.ne.s32.totalorder %s412_s6, %s508_s7  ;;  %p514_p4 = scmp.lt.s32.totalorder %s508_s7, %s508_s7 }
  0x2b   :  { %428 = vmatpush1.bf16.msra.mxu0 %v427_v9  ;;  %v437_v18 = vpack.c.bf16 %v66_v16, %v58_v15  ;;  %v63_v20 = vld [vmem:[#allocation5 + $0xc0] sm:$0xff]  ;;  %v65_v23 = vld [vmem:[#allocation5 + $0xd0] sm:$0xff]  ;;  %v44_v24 = vld [vmem:[#allocation5 + $0x28] sm:$0xff] }
  0x2c   :  { %436 = vmatpush1.bf16.msra.mxu1 %v435_v13  ;;  %v431_v22 = vpack.c.bf16 %v63_v20, %v55_v19  ;;  %430 = vmatprep.subr.bf16.mxu0 %v429_v17  ;;  %v439_v25 = vpack.c.bf16 %v65_v23, %v57_v21  ;;  %v38_v26 = vld [vmem:[#allocation2] sm:$0x3]  ;;  %v52_v27 = vld [vmem:[#allocation5 + $0x68] sm:$0xff]  ;;  %v43_v32 = vld [vmem:[#allocation5 + $0x20] sm:$0xff]  ;;  %v374_v56 = vsub.s32 %v371_v53, %v373_v54  ;;  %p515_p5 = por %p514_p4, %p513_p3 }
  0x2d   :  { %438 = vmatprep.subr.bf16.mxu1 %v437_v18  ;;  %v46_v28 = vld [vmem:[#allocation5 + $0x38] sm:$0xff]  ;;  %v441_v30 = vpack.c.bf16 %v52_v27, %v44_v24  ;;  %v51_v33 = vld [vmem:[#allocation5 + $0x60] sm:$0xff]  ;;  %v45_v34 = vld [vmem:[#allocation5 + $0x30] sm:$0xff] }
  0x2e   :  { %v54_v29 = vld [vmem:[#allocation5 + $0x78] sm:$0xff]  ;;  %v443_v35 = vpack.c.bf16 %v51_v33, %v43_v32  ;;  %v53_v36 = vld [vmem:[#allocation5 + $0x70] sm:$0xff]  ;;  %v60_v37 = vld [vmem:[#allocation5 + $0xa8] sm:$0xff]  ;;  %p516_p6 = pnand %p515_p5, %p509_p2 }
  0x2f   :  { %v449_v31 = vpack.c.bf16 %v54_v29, %v46_v28  ;;  %432 = vmatpush1.bf16.msra.mxu0 %v431_v22  ;;  %v68_v38 = vld [vmem:[#allocation5 + $0xe8] sm:$0xff]  ;;  %v451_v39 = vpack.c.bf16 %v53_v36, %v45_v34  ;;  %v62_v41 = vld [vmem:[#allocation5 + $0xb8] sm:$0xff]  ;;  %v59_v43 = vld [vmem:[#allocation5 + $0xa0] sm:$0xff] }
  0x30   :  { %440 = vmatpush1.bf16.msra.mxu1 %v439_v25  ;;  %442 = vmatprep.subr.bf16.mxu0 %v441_v30  ;;  %v445_v40 = vpack.c.bf16 %v68_v38, %v60_v37  ;;  %v70_v42 = vld [vmem:[#allocation5 + $0xf8] sm:$0xff]  ;;  %v67_v45 = vld [vmem:[#allocation5 + $0xe0] sm:$0xff]  ;;  %v61_v46 = vld [vmem:[#allocation5 + $0xb0] sm:$0xff] }
  0x31   :  { %450 = vmatprep.subr.bf16.mxu1 %v449_v31  ;;  %v453_v44 = vpack.c.bf16 %v70_v42, %v62_v41  ;;  %v69_v47 = vld [vmem:[#allocation5 + $0xf0] sm:$0xff]  ;;  %v447_v48 = vpack.c.bf16 %v67_v45, %v59_v43 }
  0x32   :  { %421 = vmatmul.mubr.msk.f32.vlgmr.msra.gmra.mrb[0].mxu0 %vm71_vm0, %v38_v26  ;;  %v455_v49 = vpack.c.bf16 %v69_v47, %v61_v46 }
  0x33   :  { %422 = vmatmul.mubr.msk.f32.vlgmr.msra.gmra.mrb[0].mxu1 %vm71_vm0, %v38_v26  ;;  %444 = vmatpush1.bf16.msra.mxu0 %v443_v35 }
  0x34   :  { %452 = vmatpush1.bf16.msra.mxu1 %v451_v39  ;;  %446 = vmatprep.subr.bf16.mxu0 %v445_v40 }
  0x35   :  { %454 = vmatprep.subr.bf16.mxu1 %v453_v44  ;;  %281 = vmatprep.mubr.f32.mxu0 %v540_v0 }
  0x36   :  { %352 = vmatprep.mubr.f32.mxu1 %v540_v0 }
  0x37   :  { %448 = vmatpush1.bf16.msra.mxu0 %v447_v48 }
  0x38   :  { %456 = vmatpush1.bf16.msra.mxu1 %v455_v49 }
  0x3a   :  { %423 = vmatmul.mubr.msk.f32.vlgmr.msra.gmra.mrb[2].mxu0 %vm71_vm0, %v38_v26 }
  0x3b   :  { %424 = vmatmul.mubr.msk.f32.vlgmr.msra.gmra.mrb[2].mxu1 %vm71_vm0, %v38_v26 }
 0x105   :  { %v141_v55 = vpop.f32.mrb[0].mxu0 }
 0x106   :  { %v212_v57 = vpop.f32.mrb[0].mxu1  ;;  %v143_v58 = vpop.f32.mrb[1].mxu0 }
 0x107   :  { %v367_v59 = vcombine.low %v141_v55, %v143_v58  ;;  %v214_v60 = vpop.f32.mrb[1].mxu1 }
 0x108   :  { %v368_v61 = vcombine.low %v212_v57, %v214_v60 }
 0x109   :  { %v375_v62 = vrot.slane %v367_v59, %v374_v56 }
 0x10a   :  { %v382_v63 = vrot.slane %v368_v61, %v374_v56 }
 0x10c   :  { %v383_v0 = vcombine.low %v375_v62, %v382_v63 }
 0x10d   :  { %v283_v1 = vpop.f32.mrb[2].mxu0 }
 0x10e   :  { %403 = vst [vmem:[#allocation7] sm:$0xff] %v383_v0  ;;  %v354_v2 = vpop.f32.mrb[2].mxu1  ;;  %v285_v3 = vpop.f32.mrb[3].mxu0 }
 0x10f   :  { %v384_v4 = vcombine.low %v283_v1, %v285_v3  ;;  %v356_v5 = vpop.f32.mrb[3].mxu1 }
 0x110   :  { %v385_v6 = vcombine.low %v354_v2, %v356_v5 }
 0x111   :  { %v392_v7 = vrot.slane %v384_v4, %v374_v56 }
 0x112   :  { %v399_v8 = vrot.slane %v385_v6, %v374_v56 }
 0x114   :  { %v400_v9 = vcombine.low %v392_v7, %v399_v8 }
 0x116   :  { %404 = vst [vmem:[#allocation7 + $0x8] sm:$0xff] %v400_v9 }
 0x117   :  { %519 = shalt.err (!%p516_p6)
}
 0x118   :  { %s520_s10 = scalar_lea.hbm %s611_s2, 256 }
 0x119   :  { %p521_p7 = scmp.ne.s32.totalorder %s611_s2, %s520_s10  ;;  %p524_p8 = scmp.lt.u32.totalorder %s520_s10, %s611_s2 }
 0x11b   :  { %p526_p9 = pnand %p524_p8, %p521_p7 }
 0x11d   :  { %529 = shalt.err (!%p526_p9)
}
 0x11e   :  { %414 = dma.vmem_to_hbm [thread:$0]  %s412_s6, 256, %s611_s2, [#allocation4]  }
 0x11f   :  { %534 = dma.done.wait [#allocation4], 256  }
 0x120   :  { %535 = vsyncadd [#allocation4], 4294967040 }
 0x121   :  { %418 = vsyncpa [#allocation3], 1 }
 0x122   :  { %419 = vsyncpa [#allocation6], 1 }
 0x123   :  { %420 = vsyncpa [#allocation4], 1 }

</bundles_post_ra>
